<compile_context>
chip_gen: v6e
topology: v6e:2x2x1
jax: 0.10.0
libtpu: 0.0.40
codegen_flags: <defaults>
</compile_context>

<pallas_src>
import functools

import jax
import jax.numpy as jnp
from jax import lax
from jax.experimental import pallas as pl
from jax.experimental.pallas import tpu as pltpu

LANES = 128
SUBLANES = 8


def _pinball_kernel(y_ref, yp_ref, out_ref, acc_ref, *, tau, n_valid, block_rows):
    i = pl.program_id(0)
    n_blocks = pl.num_programs(0)

    @pl.when(i == 0)
    def _():
        acc_ref[...] = jnp.zeros_like(acc_ref)

    y = y_ref[...].astype(jnp.float32)
    yp = yp_ref[...].astype(jnp.float32)
    diff = y - yp
    loss = jnp.maximum(diff * tau, -diff * (1.0 - tau))

    # Non-last blocks are always fully valid: no mask work, just VPU adds into
    # the vreg-shaped accumulator (leading-axis sum -> no XLU on the hot path).
    @pl.when(i < n_blocks - 1)
    def _():
        acc_ref[...] += loss.reshape(block_rows // SUBLANES, SUBLANES, LANES).sum(
            axis=0
        )

    # Last block: mask the padded / out-of-bounds tail, fold in, finalize mean.
    @pl.when(i == n_blocks - 1)
    def _():
        # Flat element index *within this block* (block_rows*128 << 2^31, so
        # int32 is safe; n_valid is assumed < 2^31 elements).
        row_ids = lax.broadcasted_iota(jnp.int32, (block_rows, LANES), 0)
        col_ids = lax.broadcasted_iota(jnp.int32, (block_rows, LANES), 1)
        flat_in_block = row_ids * LANES + col_ids
        remaining = jnp.int32(n_valid) - i * jnp.int32(block_rows * LANES)
        masked = jnp.where(flat_in_block < remaining, loss, 0.0)
        acc = acc_ref[...] + masked.reshape(
            block_rows // SUBLANES, SUBLANES, LANES
        ).sum(axis=0)
        total = jnp.sum(acc)
        out_ref[...] = jnp.reshape(total * jnp.float32(1.0 / n_valid), (1, 1))


def pinball_loss(y, y_pred, tau: float = 0.1, block_rows: int = 2048):
    """Pallas TPU implementation of PinballLoss.forward. Returns a scalar."""
    assert y.shape == y_pred.shape
    n = int(y.size)
    assert n > 0

    y_flat = jnp.ravel(y)
    yp_flat = jnp.ravel(y_pred)

    # Lane alignment: reshape to (rows, 128).  Pad only the small tail when the
    # element count is not 128-aligned (and guarantee at least one full 16-row
    # sublane group so the block never exceeds the array's row extent).
    rows = pl.cdiv(n, LANES)
    rows_padded = max(rows, 16)
    pad = rows_padded * LANES - n
    if pad:
        y_flat = jnp.pad(y_flat, (0, pad))
        yp_flat = jnp.pad(yp_flat, (0, pad))
    y2d = y_flat.reshape(rows_padded, LANES)
    yp2d = yp_flat.reshape(rows_padded, LANES)

    # Effective block rows: multiple of 16 (covers f32 and bf16 sublane tiling),
    # capped by both the requested block_rows and the slab size.
    # 2048 x 128 f32 tiles -> 4 MiB of double-buffered input VMEM: fits every
    # generation's default scoped VMEM limit (incl. v5e's 16 MiB), so no
    # vmem_limit_bytes override is needed.
    br = min(int(block_rows), rows_padded)
    br = max((br // 16) * 16, 16)
    num_blocks = pl.cdiv(rows_padded, br)

    kernel = functools.partial(
        _pinball_kernel, tau=float(tau), n_valid=n, block_rows=br
    )

    out = pl.pallas_call(
        kernel,
        out_shape=jax.ShapeDtypeStruct((1, 1), jnp.float32),
        grid_spec=pltpu.PrefetchScalarGridSpec(
            num_scalar_prefetch=0,
            grid=(num_blocks,),
            in_specs=[
                pl.BlockSpec((br, LANES), lambda i: (i, 0)),
                pl.BlockSpec((br, LANES), lambda i: (i, 0)),
            ],
            out_specs=pl.BlockSpec((1, 1), lambda i: (0, 0)),
            scratch_shapes=[pltpu.VMEM((SUBLANES, LANES), jnp.float32)],
        ),
        compiler_params=pltpu.CompilerParams(
            dimension_semantics=("arbitrary",),
        ),
    )(y2d, yp2d)

    return out[0, 0].astype(y.dtype)


def pinball_loss_ref(y, y_pred, tau: float = 0.1):
    diff = y - y_pred
    loss = jnp.maximum(diff * tau, -diff * (1.0 - tau))
    return jnp.mean(loss)


if __name__ == "__main__":
    key = jax.random.PRNGKey(0)
    k1, k2 = jax.random.split(key)
    tau = 0.1

    # Main check: small shape consistent with a regression-target use.
    shape = (2, 4, 16, 16)
    y = jax.random.normal(k1, shape, dtype=jnp.float32)
    y_pred = jax.random.normal(k2, shape, dtype=jnp.float32)
    out = jax.block_until_ready(pinball_loss(y, y_pred, tau=tau))
    ref = pinball_loss_ref(y, y_pred, tau=tau)
    assert jnp.allclose(out, ref, rtol=1e-5, atol=1e-6), (out, ref)

    # Secondary check: unaligned element count + multi-block grid (exercises
    # the accumulation path and the masked last block).
    k3, k4 = jax.random.split(k2)
    y2 = jax.random.normal(k3, (3, 17, 41), dtype=jnp.float32)
    yp2 = jax.random.normal(k4, (3, 17, 41), dtype=jnp.float32)
    out2 = jax.block_until_ready(pinball_loss(y2, yp2, tau=0.7, block_rows=16))
    ref2 = pinball_loss_ref(y2, yp2, tau=0.7)
    assert jnp.allclose(out2, ref2, rtol=1e-5, atol=1e-6), (out2, ref2)

    print("KERNEL_OK")
</pallas_src>

<mosaic_0001>
module attributes {stable_mosaic.version = 11 : i64} {
  func.func @_pinball_kernel(%arg0: i32, %arg1: memref<16x128xf32, #tpu.memory_space<vmem>>, %arg2: memref<16x128xf32, #tpu.memory_space<vmem>>, %arg3: memref<1x1xf32, #tpu.memory_space<vmem>>, %arg4: memref<8x128xf32, #tpu.memory_space<vmem>>) attributes {dimension_semantics = [#tpu.dimension_semantics<arbitrary>], iteration_bounds = array<i64: 1>, scalar_prefetch = 0 : i64, scratch_operands = 1 : i64, tpu.core_type = #tpu.core_type<tc>, window_params = [{transform_indices = @transform_0, window_bounds = array<i64: 16, 128>}, {transform_indices = @transform_1, window_bounds = array<i64: 16, 128>}, {pipeline_mode = #tpu.pipeline_mode<synchronous>, transform_indices = @transform_2, window_bounds = array<i64: 1, 1>}]} {
    %c0_i32 = arith.constant 0 : i32
    %0 = arith.cmpi eq, %arg0, %c0_i32 : i32
    %1 = arith.extui %0 : i1 to i32
    %c0_i32_0 = arith.constant 0 : i32
    %2 = arith.cmpi ne, %1, %c0_i32_0 : i32
    scf.if %2 {
      %cst_10 = arith.constant 0.000000e+00 : f32
      %19 = vector.broadcast %cst_10 : f32 to vector<8x128xf32>
      %c0_11 = arith.constant 0 : index
      %c0_12 = arith.constant 0 : index
      %20 = vector.load %arg4[%c0_11, %c0_12] : memref<8x128xf32, #tpu.memory_space<vmem>>, vector<8x128xf32>
      tpu.vector_store %arg4[%c0_11, %c0_12], %19 {strides = array<i32>} : memref<8x128xf32, #tpu.memory_space<vmem>>, vector<8x128xf32>,
    } else {
    }
    %c0 = arith.constant 0 : index
    %c0_1 = arith.constant 0 : index
    %3 = vector.load %arg1[%c0, %c0_1] : memref<16x128xf32, #tpu.memory_space<vmem>>, vector<16x128xf32>
    %c0_2 = arith.constant 0 : index
    %c0_3 = arith.constant 0 : index
    %4 = vector.load %arg2[%c0_2, %c0_3] : memref<16x128xf32, #tpu.memory_space<vmem>>, vector<16x128xf32>
    %5 = arith.subf %3, %4 : vector<16x128xf32>
    %cst = arith.constant 1.000000e-01 : f32
    %6 = vector.broadcast %cst : f32 to vector<16x128xf32>
    %7 = arith.mulf %5, %6 : vector<16x128xf32>
    %cst_4 = arith.constant 0.000000e+00 : f32
    %8 = vector.broadcast %cst_4 : f32 to vector<16x128xf32>
    %9 = arith.subf %8, %5 : vector<16x128xf32>
    %cst_5 = arith.constant 0.899999976 : f32
    %10 = vector.broadcast %cst_5 : f32 to vector<16x128xf32>
    %11 = arith.mulf %9, %10 : vector<16x128xf32>
    %12 = arith.maximumf %7, %11 : vector<16x128xf32>
    %c0_i32_6 = arith.constant 0 : i32
    %13 = arith.cmpi slt, %arg0, %c0_i32_6 : i32
    %14 = arith.extui %13 : i1 to i32
    %c0_i32_7 = arith.constant 0 : i32
    %15 = arith.cmpi ne, %14, %c0_i32_7 : i32
    scf.if %15 {
      %c0_10 = arith.constant 0 : index
      %c0_11 = arith.constant 0 : index
      %19 = vector.load %arg4[%c0_10, %c0_11] : memref<8x128xf32, #tpu.memory_space<vmem>>, vector<8x128xf32>
      %20 = vector.shape_cast %12 : vector<16x128xf32> to vector<2x8x128xf32>
      %cst_12 = arith.constant dense<0.000000e+00> : vector<8x128xf32>
      %21 = vector.multi_reduction <add>, %20, %cst_12 [0] : vector<2x8x128xf32> to vector<8x128xf32>
      %22 = arith.addf %19, %21 : vector<8x128xf32>
      %c0_13 = arith.constant 0 : index
      %c0_14 = arith.constant 0 : index
      %23 = vector.load %arg4[%c0_13, %c0_14] : memref<8x128xf32, #tpu.memory_space<vmem>>, vector<8x128xf32>
      tpu.vector_store %arg4[%c0_13, %c0_14], %22 {strides = array<i32>} : memref<8x128xf32, #tpu.memory_space<vmem>>, vector<8x128xf32>,
    } else {
    }
    %c0_i32_8 = arith.constant 0 : i32
    %16 = arith.cmpi eq, %arg0, %c0_i32_8 : i32
    %17 = arith.extui %16 : i1 to i32
    %c0_i32_9 = arith.constant 0 : i32
    %18 = arith.cmpi ne, %17, %c0_i32_9 : i32
    scf.if %18 {
      %19 = tpu.iota {dimensions = array<i32: 0>} : vector<16x128xi32>
      %20 = tpu.iota {dimensions = array<i32: 1>} : vector<16x128xi32>
      %c128_i32 = arith.constant 128 : i32
      %21 = vector.broadcast %c128_i32 : i32 to vector<16x128xi32>
      %22 = arith.muli %19, %21 : vector<16x128xi32>
      %23 = arith.addi %22, %20 : vector<16x128xi32>
      %c2048_i32 = arith.constant 2048 : i32
      %24 = arith.muli %arg0, %c2048_i32 : i32
      %c2048_i32_10 = arith.constant 2048 : i32
      %25 = arith.subi %c2048_i32_10, %24 : i32
      %26 = vector.broadcast %25 : i32 to vector<16x128xi32>
      %27 = arith.cmpi slt, %23, %26 : vector<16x128xi32>
      %cst_11 = arith.constant 0.000000e+00 : f32
      %28 = vector.broadcast %cst_11 : f32 to vector<16x128xf32>
      %29 = arith.select %27, %12, %28 : vector<16x128xi1>, vector<16x128xf32>
      %c0_12 = arith.constant 0 : index
      %c0_13 = arith.constant 0 : index
      %30 = vector.load %arg4[%c0_12, %c0_13] : memref<8x128xf32, #tpu.memory_space<vmem>>, vector<8x128xf32>
      %31 = vector.shape_cast %29 : vector<16x128xf32> to vector<2x8x128xf32>
      %cst_14 = arith.constant dense<0.000000e+00> : vector<8x128xf32>
      %32 = vector.multi_reduction <add>, %31, %cst_14 [0] : vector<2x8x128xf32> to vector<8x128xf32>
      %33 = arith.addf %30, %32 : vector<8x128xf32>
      %34 = vector.shape_cast %33 : vector<8x128xf32> to vector<1x8x128xf32>
      %cst_15 = arith.constant dense<0.000000e+00> : vector<1xf32>
      %35 = vector.multi_reduction <add>, %34, %cst_15 [1, 2] : vector<1x8x128xf32> to vector<1xf32>
      %36 = vector.shape_cast %35 : vector<1xf32> to vector<1x1x1xf32>
      %37 = vector.extract %36[0, 0, 0] : f32 from vector<1x1x1xf32>
      %cst_16 = arith.constant 4.8828125E-4 : f32
      %38 = arith.mulf %37, %cst_16 : f32
      %39 = vector.broadcast %38 : f32 to vector<1x1xf32>
      %c0_17 = arith.constant 0 : index
      %c0_18 = arith.constant 0 : index
      %40 = vector.load %arg3[%c0_17, %c0_18] : memref<1x1xf32, #tpu.memory_space<vmem>>, vector<1x1xf32>
      tpu.vector_store %arg3[%c0_17, %c0_18], %39 {strides = array<i32>} : memref<1x1xf32, #tpu.memory_space<vmem>>, vector<1x1xf32>,
    } else {
    }
    return
  }
  func.func @transform_0(%arg0: i32) -> (i32, i32) {
    %c0_i32 = arith.constant 0 : i32
    %c0_i32_0 = arith.constant 0 : i32
    return %arg0, %c0_i32 : i32, i32
  }
  func.func @transform_1(%arg0: i32) -> (i32, i32) {
    %c0_i32 = arith.constant 0 : i32
    %c0_i32_0 = arith.constant 0 : i32
    return %arg0, %c0_i32 : i32, i32
  }
  func.func @transform_2(%arg0: i32) -> (i32, i32) {
    %c0_i32 = arith.constant 0 : i32
    %c0_i32_0 = arith.constant 0 : i32
    %c0_i32_1 = arith.constant 0 : i32
    return %c0_i32, %c0_i32_0 : i32, i32
  }
}

</mosaic_0001>

<bundles_post_ra>
// kernel: tpu_custom_call.1
= control target key start
LH: loop header
LB: loop body
LE: loop exit
PB: predicated region body
PF: predicated region fallthrough
CT: control target
= control target key end

     0   :  { %7 = vsyncpa [#allocation4], 0  ;;  %s220_s0 = inlined_call_operand.hbm [shape: f32[16,128], index: 0, kind: input, shape index: {}]   ;;  %s221_s1 = inlined_call_operand.hbm [shape: f32[16,128], index: 1, kind: input, shape index: {}]   ;;  %s222_s2 = inlined_call_operand.hbm [shape: f32[1,1], index: 2, kind: output, shape index: {}]  }
   0x1   :  { %8 = vsyncpa [#allocation7], 0 }
   0x2   :  { %9 = vsyncpa [#allocation5], 0  ;;  %s191_s9 = smov [#allocation3]  }
   0x3   :  { %s15_s10 = sshll.u32 %s191_s9, 4  ;;  %s16_s10 = int_to_ptr.vmem [resolvable:$true] %s15_s10 }
   0x4   :  { %s133_s11 = scalar_lea.vmem %s16_s10, 256  ;;  %p138_p1 = scmp.lt.s32.totalorder %s16_s10, %s16_s10 }
   0x5   :  { %p134_p0 = scmp.ne.s32.totalorder %s16_s10, %s133_s11  ;;  %p139_p2 = scmp.lt.s32.totalorder %s133_s11, %s133_s11 }
   0x7   :  { %p140_p3 = por %p139_p2, %p138_p1 }
   0x9   :  { %p141_p4 = pnand %p140_p3, %p134_p0 }
   0xb   :  { %144 = shalt.err (!%p141_p4)
}
   0xc   :  { %s192_s12 = smov 128   ;;  %s193_s13 = smov 8  }
   0xd   :  { %21 = dma.hbm_to_vmem [thread:$0]  %s220_s0, 256, %s16_s10, [#allocation4], %s192_s12, %s192_s12, %s193_s13  }
   0xe   :  { %s194_s16 = smov [#allocation6]  }
   0xf   :  { %s27_s17 = sshll.u32 %s194_s16, 4  ;;  %s28_s17 = int_to_ptr.vmem [resolvable:$true] %s27_s17 }
  0x10   :  { %s153_s18 = scalar_lea.vmem %s28_s17, 256  ;;  %p158_p6 = scmp.lt.s32.totalorder %s28_s17, %s28_s17 }
  0x11   :  { %p154_p5 = scmp.ne.s32.totalorder %s28_s17, %s153_s18  ;;  %p159_p7 = scmp.lt.s32.totalorder %s153_s18, %s153_s18 }
  0x13   :  { %p160_p8 = por %p159_p7, %p158_p6 }
  0x15   :  { %p161_p9 = pnand %p160_p8, %p154_p5 }
  0x17   :  { %164 = shalt.err (!%p161_p9)
}
  0x18   :  { %33 = dma.hbm_to_vmem [thread:$0]  %s221_s1, 256, %s28_s17, [#allocation7], %s192_s12, %s192_s12, %s193_s13  }
  0x19   :  { %185 = dma.done.wait [#allocation4], 256  }
  0x1a   :  { %186 = vsyncadd [#allocation4], 4294967040 }
  0x1b   :  { %187 = dma.done.wait [#allocation7], 256  }
  0x1c   :  { %188 = vsyncadd [#allocation7], 4294967040  ;;  %v70_v0 = vlaneseq  ;;  %v45_v6 = vld [vmem:[#allocation3] sm:$0xff]  ;;  %v46_v7 = vld [vmem:[#allocation3 + $0x8] sm:$0xff]  ;;  %s195_s0 = smov [#allocation8]   ;;  %vm100_vm2 = vcmask 0  }
  0x1d   :  { %v47_v8 = vld [vmem:[#allocation6] sm:$0xff]  ;;  %v48_v9 = vld [vmem:[#allocation6 + $0x8] sm:$0xff]  ;;  %s108_s1 = sshll.u32 %s195_s0, 4  ;;  %s109_s1 = int_to_ptr.vmem [resolvable:$true] %s108_s1 }
  0x1e   :  { %v71_v1 = vshrl.u32 %v70_v0, 7  ;;  %v74_v3 = vand.u32 127, %v70_v0  ;;  %v49_v10 = vsub.f32 %v45_v6, %v47_v8  ;;  %v50_v11 = vsub.f32 %v46_v7, %v48_v9  ;;  %s165_s23 = scalar_lea.vmem %s109_s1, 16  ;;  %s169_s24 = scalar_lea.vmem %s109_s1, 32 }
  0x1f   :  { %p166_p10 = scmp.ne.s32.totalorder %s109_s1, %s165_s23  ;;  %p170_p11 = scmp.lt.s32.totalorder %s109_s1, %s109_s1 }
  0x20   :  { %v72_v2 = vadd.s32 8, %v71_v1  ;;  %v75_v4 = vmul.u32 128, %v71_v1  ;;  %v51_v13 = vmul.f32 0.1, %v49_v10  ;;  %v53_v14 = vsub.f32 0.0, %v49_v10  ;;  %p171_p12 = scmp.lt.s32.totalorder %s169_s24, %s165_s23 }
  0x21   :  { %v52_v16 = vmul.f32 0.1, %v50_v11  ;;  %v54_v17 = vsub.f32 0.0, %v50_v11 }
  0x22   :  { %v76_v5 = vmul.u32 128, %v72_v2  ;;  %v77_v12 = vadd.s32 %v75_v4, %v74_v3  ;;  %v55_v18 = vmul.f32 0.9, %v53_v14  ;;  %p172_p13 = por %p171_p12, %p170_p11 }
  0x23   :  { %v56_v19 = vmul.f32 0.9, %v54_v17 }
  0x24   :  { %v78_v15 = vadd.s32 %v76_v5, %v74_v3  ;;  %vm82_vm0 = vcmp.lt.s32.totalorder %v77_v12, 2048  ;;  %v57_v20 = vmax.f32 %v51_v13, %v55_v18  ;;  %p173_p0 = pnand %p172_p13, %p166_p10 }
  0x25   :  { %v58_v21 = vmax.f32 %v52_v16, %v56_v19 }
  0x26   :  { %vm83_vm1 = vcmp.lt.s32.totalorder %v78_v15, 2048  ;;  %v84_v22 = vsel %vm82_vm0, %v57_v20, 0.0 }
  0x27   :  { %v85_v23 = vsel %vm83_vm1, %v58_v21, 0.0 }
  0x28   :  { %v87_v24 = vadd.f32 %v85_v23, %v84_v22 }
  0x2a   :  { %89 = vadd.xlane.f32.xlu0 %v87_v24 }
  0xb3   :  { %v90_v25 = vpop.xlane.xlu0 %89 }
  0xb4   :  { %v91_v26 = vrot.slane %v90_v25, 4 }
  0xb6   :  { %v92_v27 = vadd.f32 %v91_v26, %v90_v25 }
  0xb8   :  { %v93_v28 = vrot.slane %v92_v27, 2 }
  0xba   :  { %v94_v29 = vadd.f32 %v93_v28, %v92_v27 }
  0xbc   :  { %v95_v30 = vrot.slane %v94_v29, 1 }
  0xbe   :  { %v96_v31 = vadd.f32 %v95_v30, %v94_v29 }
  0xc0   :  { %118 = vpush %v96_v31 }
  0xf1   :  { %s119_s21 = spop %118 }
  0xf2   :  { %s98_s22 = smul.f32 0.00048828125, %s119_s21 }
  0xf4   :  { %v99_v32 = vstv %s98_s22 }
  0xf5   :  { %101 = vst.msk [vmem:[#allocation8] sm:$0x1] %vm100_vm2, %v99_v32 }
  0xf6   :  { %176 = shalt.err (!%p173_p0)
}
  0xf7   :  { %111 = dma.vmem_to_hbm [thread:$0]  %s109_s1, 16, %s222_s2, [#allocation5]  }
  0xf8   :  { %189 = dma.done.wait [#allocation5], 16  }
  0xf9   :  { %190 = vsyncadd [#allocation5], 4294967280 }
  0xfa   :  { %115 = vsyncpa [#allocation4], 1 }
  0xfb   :  { %116 = vsyncpa [#allocation7], 1 }
  0xfc   :  { %117 = vsyncpa [#allocation5], 1 }

</bundles_post_ra>
